<compile_context>
chip_gen: v7x
topology: tpu7x:2x2x1
jax: 0.10.0
libtpu: 0.0.40
codegen_flags: <defaults>
</compile_context>

<pallas_src>
import jax
import jax.numpy as jnp
from jax.experimental import pallas as pl
from jax.experimental.pallas import tpu as pltpu


def _round_up(x: int, m: int) -> int:
    return (x + m - 1) // m * m


def _linear_kernel(x_ref, wt_ref, b_ref, o_ref):
    # x_ref : (TM, Kp)   VMEM, bf16 tile of the flattened input
    # wt_ref: (Kp, Np)   VMEM, bf16, resident across the M grid
    # b_ref : (1,  Np)   VMEM, f32,  resident across the M grid
    # o_ref : (TM, Np)   VMEM
    acc = jnp.dot(x_ref[...], wt_ref[...], preferred_element_type=jnp.float32)
    o_ref[...] = (acc + b_ref[...]).astype(o_ref.dtype)


def linear_predictor(x, weight, bias, *, block_m=512, compute_dtype=jnp.bfloat16):
    """Eval-mode LinearPredictor.forward.

    x: [batch, seq, n_in]; weight: [n_out, n_in]; bias: [n_out].
    Returns [batch, seq, n_out] in x.dtype.
    """
    batch, seq, n_in = x.shape
    n_out, _ = weight.shape
    m = batch * seq

    # Pad feature dims to 128 lanes (lane-dense loads/stores, full MXU result).
    k_pad = _round_up(n_in, 128)
    n_pad = _round_up(n_out, 128)

    # Row tile: 8-sublane aligned, no larger than the (padded) M extent.
    tm = min(block_m, _round_up(m, 8))
    m_pad = _round_up(m, tm)
    grid_m = m_pad // tm

    # --- one-time parameter prep (in a real model this is cached at load time,
    #     not re-done per forward) -------------------------------------------
    x2d = x.reshape(m, n_in).astype(compute_dtype)
    if (m_pad, k_pad) != (m, n_in):
        x2d = jnp.pad(x2d, ((0, m_pad - m), (0, k_pad - n_in)))

    wt = jnp.zeros((k_pad, n_pad), compute_dtype)
    wt = wt.at[:n_in, :n_out].set(weight.T.astype(compute_dtype))
    b2d = jnp.zeros((1, n_pad), jnp.float32)
    b2d = b2d.at[0, :n_out].set(bias.astype(jnp.float32))

    out_dtype = x.dtype
    cost = pl.CostEstimate(
        flops=2 * m_pad * k_pad * n_pad,
        transcendentals=0,
        bytes_accessed=(x2d.size * x2d.dtype.itemsize
                        + wt.size * wt.dtype.itemsize
                        + b2d.size * b2d.dtype.itemsize
                        + m_pad * n_pad * jnp.dtype(out_dtype).itemsize),
    )

    out2d = pl.pallas_call(
        _linear_kernel,
        out_shape=jax.ShapeDtypeStruct((m_pad, n_pad), out_dtype),
        grid_spec=pltpu.PrefetchScalarGridSpec(
            num_scalar_prefetch=0,
            grid=(grid_m,),
            in_specs=[
                pl.BlockSpec((tm, k_pad), lambda i: (i, 0)),     # x tile, pipelined
                pl.BlockSpec((k_pad, n_pad), lambda i: (0, 0)),  # W^T, resident
                pl.BlockSpec((1, n_pad), lambda i: (0, 0)),      # bias, resident
            ],
            out_specs=pl.BlockSpec((tm, n_pad), lambda i: (i, 0)),
        ),
        compiler_params=pltpu.CompilerParams(
            dimension_semantics=("parallel",),
        ),
        cost_estimate=cost,
    )(x2d, wt, b2d)

    return out2d[:m, :n_out].reshape(batch, seq, n_out)


if __name__ == "__main__":
    key = jax.random.PRNGKey(0)
    kx, kw = jax.random.split(key)

    batch, seq, n_in, n_out = 2, 8, 32, 16

    x = jax.random.normal(kx, (batch, seq, n_in), dtype=jnp.float32)

    # Deterministic params: xavier-normal weight (as in reset_parameters), zero bias.
    std = (2.0 / (n_in + n_out)) ** 0.5
    weight = std * jax.random.normal(kw, (n_out, n_in), dtype=jnp.float32)
    bias = jnp.zeros((n_out,), dtype=jnp.float32)

    out = linear_predictor(x, weight, bias)
    jax.block_until_ready(out)
    assert out.shape == (batch, seq, n_out)

    # Reference 1: same bf16-input / f32-accumulate math as the kernel.
    ref_bf16 = (
        jnp.dot(x.astype(jnp.bfloat16).reshape(-1, n_in),
                weight.T.astype(jnp.bfloat16),
                preferred_element_type=jnp.float32)
        .reshape(batch, seq, n_out) + bias
    )
    assert jnp.allclose(out, ref_bf16, atol=1e-3, rtol=1e-3)

    # Reference 2: full-precision module semantics (loose tol for bf16 MXU inputs).
    ref_f32 = x @ weight.T + bias
    assert jnp.allclose(out, ref_f32, atol=5e-2, rtol=5e-2)

    # Exercise a multi-step (pipelined) grid with a small row tile as well.
    out_tiled = linear_predictor(x, weight, bias, block_m=8)
    jax.block_until_ready(out_tiled)
    assert jnp.allclose(out_tiled, ref_bf16, atol=1e-3, rtol=1e-3)

    print("KERNEL_OK")
</pallas_src>

<mosaic_0001>
module attributes {stable_mosaic.version = 11 : i64} {
  func.func @_linear_kernel(%arg0: i32, %arg1: memref<16x128xbf16, #tpu.memory_space<vmem>>, %arg2: memref<128x128xbf16, #tpu.memory_space<vmem>>, %arg3: memref<1x128xf32, #tpu.memory_space<vmem>>, %arg4: memref<16x128xf32, #tpu.memory_space<vmem>>) attributes {dimension_semantics = [#tpu.dimension_semantics<parallel>], iteration_bounds = array<i64: 1>, scalar_prefetch = 0 : i64, scratch_operands = 0 : i64, tpu.core_type = #tpu.core_type<tc>, window_params = [{transform_indices = @transform_0, window_bounds = array<i64: 16, 128>}, {pipeline_mode = #tpu.pipeline_mode<synchronous>, transform_indices = @transform_1, window_bounds = array<i64: 128, 128>}, {pipeline_mode = #tpu.pipeline_mode<synchronous>, transform_indices = @transform_2, window_bounds = array<i64: 1, 128>}, {transform_indices = @transform_3, window_bounds = array<i64: 16, 128>}]} {
    %c0 = arith.constant 0 : index
    %c0_0 = arith.constant 0 : index
    %0 = vector.load %arg1[%c0, %c0_0] : memref<16x128xbf16, #tpu.memory_space<vmem>>, vector<16x128xbf16>
    %c0_1 = arith.constant 0 : index
    %c0_2 = arith.constant 0 : index
    %1 = vector.load %arg2[%c0_1, %c0_2] : memref<128x128xbf16, #tpu.memory_space<vmem>>, vector<128x128xbf16>
    %cst = arith.constant dense<0.000000e+00> : vector<16x128xf32>
    %2 = tpu.matmul %0, %1, %cst {dimension_numbers = #tpu.dot_dimension_numbers<[1], [0], [0], [1], [0, 0, 1, 1], [], []>} : vector<16x128xbf16>, vector<128x128xbf16>, vector<16x128xf32> -> vector<16x128xf32>
    %c0_3 = arith.constant 0 : index
    %c0_4 = arith.constant 0 : index
    %3 = vector.load %arg3[%c0_3, %c0_4] : memref<1x128xf32, #tpu.memory_space<vmem>>, vector<1x128xf32>
    %4 = vector.broadcast %3 : vector<1x128xf32> to vector<16x128xf32>
    %5 = arith.addf %2, %4 : vector<16x128xf32>
    %c0_5 = arith.constant 0 : index
    %c0_6 = arith.constant 0 : index
    %6 = vector.load %arg4[%c0_5, %c0_6] : memref<16x128xf32, #tpu.memory_space<vmem>>, vector<16x128xf32>
    tpu.vector_store %arg4[%c0_5, %c0_6], %5 {strides = array<i32>} : memref<16x128xf32, #tpu.memory_space<vmem>>, vector<16x128xf32>,
    return
  }
  func.func @transform_0(%arg0: i32) -> (i32, i32) {
    %c0_i32 = arith.constant 0 : i32
    %c0_i32_0 = arith.constant 0 : i32
    return %arg0, %c0_i32 : i32, i32
  }
  func.func @transform_1(%arg0: i32) -> (i32, i32) {
    %c0_i32 = arith.constant 0 : i32
    %c0_i32_0 = arith.constant 0 : i32
    %c0_i32_1 = arith.constant 0 : i32
    return %c0_i32, %c0_i32_0 : i32, i32
  }
  func.func @transform_2(%arg0: i32) -> (i32, i32) {
    %c0_i32 = arith.constant 0 : i32
    %c0_i32_0 = arith.constant 0 : i32
    %c0_i32_1 = arith.constant 0 : i32
    return %c0_i32, %c0_i32_0 : i32, i32
  }
  func.func @transform_3(%arg0: i32) -> (i32, i32) {
    %c0_i32 = arith.constant 0 : i32
    %c0_i32_0 = arith.constant 0 : i32
    return %arg0, %c0_i32 : i32, i32
  }
}

</mosaic_0001>

<bundles_post_ra>
// kernel: tpu_custom_call.1
= control target key start
LH: loop header
LB: loop body
LE: loop exit
PB: predicated region body
PF: predicated region fallthrough
CT: control target
= control target key end

     0   :  { %8 = vsyncpa [#allocation3], 0  ;;  %s381_s0 = inlined_call_operand.hbm [shape: bf16[16,128], index: 0, kind: input, shape index: {}]   ;;  %s382_s1 = inlined_call_operand.hbm [shape: bf16[128,128], index: 1, kind: input, shape index: {}]   ;;  %s383_s2 = inlined_call_operand.vmem [shape: f32[1,128], index: 2, kind: input, shape index: {}]   ;;  %s384_s3 = inlined_call_operand.hbm [shape: f32[16,128], index: 3, kind: output, shape index: {}]  }
   0x1   :  { %9 = vsyncpa [#allocation6], 0 }
   0x2   :  { %10 = vsyncpa [#allocation4], 0  ;;  %s313_s12 = smov [#allocation2]   ;;  %s241_s16 = scalar_lea.hbm %s381_s0, 128 }
   0x3   :  { %s16_s13 = sshll.u32 %s313_s12, 4  ;;  %p242_p0 = scmp.ne.s32.totalorder %s381_s0, %s241_s16  ;;  %s17_s13 = int_to_ptr.vmem [resolvable:$true] %s16_s13 }
   0x4   :  { %p245_p1 = scmp.lt.u32.totalorder %s241_s16, %s381_s0 }
   0x6   :  { %p247_p2 = pnand %p245_p1, %p242_p0 }
   0x8   :  { %250 = shalt.err (!%p247_p2)
}
   0x9   :  { %s251_s21 = scalar_lea.vmem %s17_s13, 128  ;;  %p256_p4 = scmp.lt.s32.totalorder %s17_s13, %s17_s13 }
   0xa   :  { %p252_p3 = scmp.ne.s32.totalorder %s17_s13, %s251_s21  ;;  %p257_p5 = scmp.lt.s32.totalorder %s251_s21, %s251_s21 }
   0xc   :  { %p258_p6 = por %p257_p5, %p256_p4 }
   0xe   :  { %p259_p7 = pnand %p258_p6, %p252_p3 }
  0x10   :  { %262 = shalt.err (!%p259_p7)
}
  0x11   :  { %s314_s22 = smov 64   ;;  %s315_s23 = smov 4  }
  0x12   :  { %22 = dma.hbm_to_vmem [thread:$0]  %s381_s0, 128, %s17_s13, [#allocation3], %s314_s22, %s314_s22, %s315_s23  }
  0x13   :  { %s316_s26 = smov [#allocation5]   ;;  %s263_s30 = scalar_lea.hbm %s382_s1, 1024 }
  0x14   :  { %s28_s27 = sshll.u32 %s316_s26, 4  ;;  %p264_p8 = scmp.ne.s32.totalorder %s382_s1, %s263_s30  ;;  %s29_s27 = int_to_ptr.vmem [resolvable:$true] %s28_s27 }
  0x15   :  { %p267_p9 = scmp.lt.u32.totalorder %s263_s30, %s382_s1 }
  0x17   :  { %p269_p10 = pnand %p267_p9, %p264_p8 }
  0x19   :  { %272 = shalt.err (!%p269_p10)
}
  0x1a   :  { %s273_s8 = scalar_lea.vmem %s29_s27, 1024  ;;  %p278_p12 = scmp.lt.s32.totalorder %s29_s27, %s29_s27 }
  0x1b   :  { %p274_p11 = scmp.ne.s32.totalorder %s29_s27, %s273_s8  ;;  %p279_p13 = scmp.lt.s32.totalorder %s273_s8, %s273_s8 }
  0x1d   :  { %p280_p0 = por %p279_p13, %p278_p12 }
  0x1f   :  { %p281_p1 = pnand %p280_p0, %p274_p11 }
  0x21   :  { %284 = shalt.err (!%p281_p1)
}
  0x22   :  { %34 = dma.hbm_to_vmem [thread:$0]  %s382_s1, 1024, %s29_s27, [#allocation6], %s314_s22, %s314_s22, %s315_s23  }
  0x23   :  { %307 = dma.done.wait [#allocation3], 128  }
  0x24   :  { %308 = vsyncadd [#allocation3], 4294967168 }
  0x25   :  { %309 = dma.done.wait [#allocation6], 1024  }
  0x26   :  { %310 = vsyncadd [#allocation6], 4294966272  ;;  %v317_v0 = vmov 0.0   ;;  %vm318_vm0 = vmmov 0   ;;  %v232_v1 = vld [vmem:[#allocation5] sm:$0xff]   ;;  %v233_v2 = vld [vmem:[#allocation5 + $0x8] sm:$0xff]  }
  0x27   :  { %203 = vmatprep.subr.bf16.mxu0 %v317_v0  ;;  %219 = vmatprep.mubr.msk.bf16.mxu0 %vm318_vm0, %v317_v0  ;;  %v234_v3 = vld [vmem:[#allocation5 + $0x10] sm:$0xff]   ;;  %v235_v4 = vld [vmem:[#allocation5 + $0x18] sm:$0xff]   ;;  %v236_v5 = vld [vmem:[#allocation5 + $0x20] sm:$0xff]   ;;  %s319_s11 = smov [#allocation7]  }
  0x28   :  { %204 = vmatpush3.bf16.msra.mxu0 %v232_v1  ;;  %v237_v6 = vld [vmem:[#allocation5 + $0x28] sm:$0xff]   ;;  %v238_v7 = vld [vmem:[#allocation5 + $0x30] sm:$0xff]   ;;  %v239_v8 = vld [vmem:[#allocation5 + $0x38] sm:$0xff]   ;;  %s171_s12 = sshll.u32 %s319_s11, 4  ;;  %s172_s12 = int_to_ptr.vmem [resolvable:$true] %s171_s12 }
  0x29   :  { %205 = vmatprep.subr.bf16.mxu0 %v317_v0  ;;  %v240_v9 = vld [vmem:[#allocation2] sm:$0xff]   ;;  %s285_s13 = scalar_lea.vmem %s172_s12, 256  ;;  %p290_p3 = scmp.lt.s32.totalorder %s172_s12, %s172_s12 }
  0x2a   :  { %v184_v10 = vld [vmem:[%s383_s2] ss:$0 sm:$0xff]  ;;  %p286_p2 = scmp.ne.s32.totalorder %s172_s12, %s285_s13  ;;  %p291_p4 = scmp.lt.s32.totalorder %s285_s13, %s285_s13 }
  0x2c   :  { %206 = vmatpush3.bf16.msra.mxu0 %v233_v2  ;;  %p292_p5 = por %p291_p4, %p290_p3 }
  0x2d   :  { %207 = vmatprep.subr.bf16.mxu0 %v317_v0 }
  0x2e   :  { %p293_p6 = pnand %p292_p5, %p286_p2 }
  0x30   :  { %208 = vmatpush3.bf16.msra.mxu0 %v234_v3 }
  0x31   :  { %209 = vmatprep.subr.bf16.mxu0 %v317_v0 }
  0x34   :  { %210 = vmatpush3.bf16.msra.mxu0 %v235_v4 }
  0x35   :  { %211 = vmatprep.subr.bf16.mxu0 %v317_v0 }
  0x38   :  { %212 = vmatpush3.bf16.msra.mxu0 %v236_v5 }
  0x39   :  { %213 = vmatprep.subr.bf16.mxu0 %v317_v0 }
  0x3c   :  { %214 = vmatpush3.bf16.msra.mxu0 %v237_v6 }
  0x3d   :  { %215 = vmatprep.subr.bf16.mxu0 %v317_v0 }
  0x40   :  { %216 = vmatpush3.bf16.msra.mxu0 %v238_v7 }
  0x41   :  { %217 = vmatprep.subr.bf16.mxu0 %v317_v0 }
  0x44   :  { %218 = vmatpush3.bf16.msra.mxu0 %v239_v8 }
  0x47   :  { %220 = vmatmul.mubr.bf16.vlgmr.msra.gmra.mrb[0].mxu0 %v240_v9 }
 0x11a   :  { %v157_v11 = vpop.f32.mrb[0].mxu0 }
 0x11b   :  { %v158_v12 = vadd.f32 %v184_v10, %v157_v11  ;;  %v221_v13 = vpop.f32.mrb[1].mxu0 }
 0x11c   :  { %v160_v14 = vpop.f32.mrb[2].mxu0 }
 0x11d   :  { %164 = vst [vmem:[#allocation7] sm:$0xff] %v158_v12  ;;  %v161_v15 = vadd.f32 %v184_v10, %v160_v14  ;;  %v222_v16 = vpop.f32.mrb[3].mxu0 }
 0x11f   :  { %165 = vst [vmem:[#allocation7 + $0x8] sm:$0xff] %v161_v15 }
 0x120   :  { %296 = shalt.err (!%p293_p6)
}
 0x121   :  { %s297_s15 = scalar_lea.hbm %s384_s3, 256 }
 0x122   :  { %p298_p7 = scmp.ne.s32.totalorder %s384_s3, %s297_s15  ;;  %p301_p8 = scmp.lt.u32.totalorder %s297_s15, %s384_s3 }
 0x124   :  { %p303_p9 = pnand %p301_p8, %p298_p7 }
 0x126   :  { %306 = shalt.err (!%p303_p9)
}
 0x127   :  { %s320_s20 = smov 128   ;;  %s321_s21 = smov 8  }
 0x128   :  { %177 = dma.vmem_to_hbm [thread:$0]  %s172_s12, 256, %s384_s3, [#allocation4], %s320_s20, %s320_s20, %s321_s21  }
 0x129   :  { %311 = dma.done.wait [#allocation4], 256  }
 0x12a   :  { %312 = vsyncadd [#allocation4], 4294967040 }
 0x12b   :  { %181 = vsyncpa [#allocation3], 1 }
 0x12c   :  { %182 = vsyncpa [#allocation6], 1 }
 0x12d   :  { %183 = vsyncpa [#allocation4], 1 }

</bundles_post_ra>
